<compile_context>
chip_gen: v5e
topology: v5e:2x2
jax: 0.10.0
libtpu: 0.0.40
codegen_flags: <defaults>
</compile_context>

<pallas_src>
import functools
import math

import jax
import jax.numpy as jnp
from jax.experimental import pallas as pl
from jax.experimental.pallas import tpu as pltpu

_VMEM_LIMIT = 64 * 1024 * 1024  # raise scoped VMEM above v5e/v6e defaults


def _row_tile(m, target=256):
    """Largest tile <= target that divides m (keeps grid steps MXU-sized)."""
    return math.gcd(m, target)


# ---------------------------------------------------------------------------
# Linear projection kernel: y = x @ W^T + b   (W stored transposed as (in,out))
# ---------------------------------------------------------------------------
def _linear_kernel(x_ref, w_ref, b_ref, o_ref):
    # x_ref: (tm, d_in), w_ref: (d_in, d_out), b_ref: (1, d_out)
    acc = jnp.dot(x_ref[...], w_ref[...], preferred_element_type=jnp.float32)
    acc = acc + b_ref[...]
    o_ref[...] = acc.astype(o_ref.dtype)


def _linear(x2d, w_t, b, *, tm):
    m, d_in = x2d.shape
    d_out = w_t.shape[1]
    itemsize = jnp.dtype(x2d.dtype).itemsize
    cost = pl.CostEstimate(
        flops=2 * m * d_in * d_out,
        transcendentals=0,
        bytes_accessed=(m * d_in + d_in * d_out + d_out + m * d_out) * itemsize,
    )
    return pl.pallas_call(
        _linear_kernel,
        out_shape=jax.ShapeDtypeStruct((m, d_out), x2d.dtype),
        grid_spec=pltpu.PrefetchScalarGridSpec(
            num_scalar_prefetch=0,
            grid=(m // tm,),
            in_specs=[
                pl.BlockSpec((tm, d_in), lambda i: (i, 0)),    # row tile of x
                pl.BlockSpec((d_in, d_out), lambda i: (0, 0)),  # resident W^T
                pl.BlockSpec((1, d_out), lambda i: (0, 0)),     # resident bias
            ],
            out_specs=pl.BlockSpec((tm, d_out), lambda i: (i, 0)),
        ),
        compiler_params=pltpu.CompilerParams(
            dimension_semantics=("parallel",),
            vmem_limit_bytes=_VMEM_LIMIT),
        cost_estimate=cost,
    )(x2d, w_t, b.reshape(1, d_out))


# ---------------------------------------------------------------------------
# Scaled dot-product attention kernel (one (batch*head, query-tile) per step)
# ---------------------------------------------------------------------------
def _mha_kernel(q_ref, k_ref, v_ref, o_ref, *, scale):
    # q_ref: (1, tq, d_k), k_ref/v_ref: (1, S, d_k), o_ref: (1, tq, d_k)
    q = q_ref[0]
    k = k_ref[0]
    v = v_ref[0]
    # scores = Q K^T / sqrt(d_k)   (contract on d_k; no explicit transpose)
    s = jax.lax.dot_general(q, k, (((1,), (1,)), ((), ())),
                            preferred_element_type=jnp.float32) * scale
    # TODO(synk): optional attention mask (mask == 0 -> -1e9) not plumbed in;
    # the demo / default forward path uses mask=None.
    s_max = jnp.max(s, axis=-1, keepdims=True)
    p = jnp.exp(s - s_max)
    p = p / jnp.sum(p, axis=-1, keepdims=True)
    o = jnp.dot(p.astype(v.dtype), v, preferred_element_type=jnp.float32)
    o_ref[0] = o.astype(o_ref.dtype)


def _attention(q, k, v, *, d_k, tq):
    # q, k, v: (batch*num_heads, seq, d_k)
    bh, seq, _ = q.shape
    scale = 1.0 / math.sqrt(d_k)
    itemsize = jnp.dtype(q.dtype).itemsize
    cost = pl.CostEstimate(
        flops=4 * bh * seq * seq * d_k,          # QK^T and PV
        transcendentals=bh * seq * seq,          # exp in softmax
        bytes_accessed=4 * bh * seq * d_k * itemsize,
    )
    kernel = functools.partial(_mha_kernel, scale=scale)
    return pl.pallas_call(
        kernel,
        out_shape=jax.ShapeDtypeStruct((bh, seq, d_k), q.dtype),
        grid_spec=pltpu.PrefetchScalarGridSpec(
            num_scalar_prefetch=0,
            grid=(bh, seq // tq),
            in_specs=[
                pl.BlockSpec((1, tq, d_k), lambda b, i: (b, i, 0)),   # Q tile
                pl.BlockSpec((1, seq, d_k), lambda b, i: (b, 0, 0)),  # full K
                pl.BlockSpec((1, seq, d_k), lambda b, i: (b, 0, 0)),  # full V
            ],
            out_specs=pl.BlockSpec((1, tq, d_k), lambda b, i: (b, i, 0)),
        ),
        compiler_params=pltpu.CompilerParams(
            dimension_semantics=("parallel", "parallel"),
            vmem_limit_bytes=_VMEM_LIMIT),
        cost_estimate=cost,
    )(q, k, v)


# ---------------------------------------------------------------------------
# Full MultiHeadAttention forward
# ---------------------------------------------------------------------------
@functools.partial(jax.jit, static_argnames=("num_heads",))
def multi_head_attention(q_in, k_in, v_in, params, *, num_heads):
    """params = (wq_t, bq, wk_t, bk, wv_t, bv, wo_t, bo); w*_t are (in, out)."""
    wq_t, bq, wk_t, bk, wv_t, bv, wo_t, bo = params
    batch, seq, d_model = q_in.shape
    d_k = d_model // num_heads
    m = batch * seq
    tm = _row_tile(m)
    tq = _row_tile(seq)

    def proj(x, w_t, b):
        return _linear(x.reshape(m, d_model), w_t, b, tm=tm)

    def split_heads(x2d):
        return (x2d.reshape(batch, seq, num_heads, d_k)
                    .transpose(0, 2, 1, 3)
                    .reshape(batch * num_heads, seq, d_k))

    qh = split_heads(proj(q_in, wq_t, bq))
    kh = split_heads(proj(k_in, wk_t, bk))
    vh = split_heads(proj(v_in, wv_t, bv))

    attn = _attention(qh, kh, vh, d_k=d_k, tq=tq)

    combined = (attn.reshape(batch, num_heads, seq, d_k)
                    .transpose(0, 2, 1, 3)
                    .reshape(m, d_model))
    out = _linear(combined, wo_t, bo, tm=tm)
    return out.reshape(batch, seq, d_model)


# ---------------------------------------------------------------------------
# Parameter init (mirrors nn.Linear(d_model, d_model) shapes, pre-transposed)
# ---------------------------------------------------------------------------
def _init_params(key, d_model, dtype=jnp.float32):
    keys = jax.random.split(key, 8)
    bound = 1.0 / math.sqrt(d_model)
    params = []
    for i in range(4):
        w = jax.random.uniform(keys[2 * i], (d_model, d_model), dtype, -bound, bound)
        b = jax.random.uniform(keys[2 * i + 1], (d_model,), dtype, -bound, bound)
        params.append(w.T)   # store as (in, out)
        params.append(b)
    return tuple(params)


# ---------------------------------------------------------------------------
# Pure-JAX reference (same math as the PyTorch module)
# ---------------------------------------------------------------------------
def _reference_mha(q_in, k_in, v_in, params, num_heads):
    wq_t, bq, wk_t, bk, wv_t, bv, wo_t, bo = params
    batch, seq, d_model = q_in.shape
    d_k = d_model // num_heads

    def proj(x, w_t, b):
        return x @ w_t + b

    def split(x):
        return x.reshape(batch, seq, num_heads, d_k).transpose(0, 2, 1, 3)

    Q, K, V = split(proj(q_in, wq_t, bq)), split(proj(k_in, wk_t, bk)), split(proj(v_in, wv_t, bv))
    s = jnp.einsum("bhqd,bhkd->bhqk", Q, K) / math.sqrt(d_k)
    p = jax.nn.softmax(s, axis=-1)
    o = jnp.einsum("bhqk,bhkd->bhqd", p, V)
    o = o.transpose(0, 2, 1, 3).reshape(batch, seq, d_model)
    return proj(o, wo_t, bo)


if __name__ == "__main__":
    batch, seq, d_model, num_heads = 2, 8, 128, 4   # d_k = 32

    key = jax.random.PRNGKey(0)
    kq, kk, kv, kp = jax.random.split(key, 4)
    Q = jax.random.normal(kq, (batch, seq, d_model), jnp.float32)
    K = jax.random.normal(kk, (batch, seq, d_model), jnp.float32)
    V = jax.random.normal(kv, (batch, seq, d_model), jnp.float32)
    params = _init_params(kp, d_model)

    out = multi_head_attention(Q, K, V, params, num_heads=num_heads)
    out = jax.block_until_ready(out)

    ref = _reference_mha(Q, K, V, params, num_heads)
    assert out.shape == (batch, seq, d_model)
    assert jnp.allclose(out, ref, atol=2e-5, rtol=2e-5)

    print("KERNEL_OK")
</pallas_src>

<mosaic_0001>
module attributes {stable_mosaic.version = 11 : i64} {
  func.func @_linear_kernel(%arg0: i32, %arg1: memref<16x128xf32, #tpu.memory_space<vmem>>, %arg2: memref<128x128xf32, #tpu.memory_space<vmem>>, %arg3: memref<1x128xf32, #tpu.memory_space<vmem>>, %arg4: memref<16x128xf32, #tpu.memory_space<vmem>>) attributes {dimension_semantics = [#tpu.dimension_semantics<parallel>], iteration_bounds = array<i64: 1>, scalar_prefetch = 0 : i64, scratch_operands = 0 : i64, tpu.core_type = #tpu.core_type<tc>, window_params = [{transform_indices = @transform_0, window_bounds = array<i64: 16, 128>}, {pipeline_mode = #tpu.pipeline_mode<synchronous>, transform_indices = @transform_1, window_bounds = array<i64: 128, 128>}, {pipeline_mode = #tpu.pipeline_mode<synchronous>, transform_indices = @transform_2, window_bounds = array<i64: 1, 128>}, {transform_indices = @transform_3, window_bounds = array<i64: 16, 128>}]} {
    %c0 = arith.constant 0 : index
    %c0_0 = arith.constant 0 : index
    %0 = vector.load %arg1[%c0, %c0_0] : memref<16x128xf32, #tpu.memory_space<vmem>>, vector<16x128xf32>
    %c0_1 = arith.constant 0 : index
    %c0_2 = arith.constant 0 : index
    %1 = vector.load %arg2[%c0_1, %c0_2] : memref<128x128xf32, #tpu.memory_space<vmem>>, vector<128x128xf32>
    %cst = arith.constant dense<0.000000e+00> : vector<16x128xf32>
    %2 = tpu.matmul %0, %1, %cst {dimension_numbers = #tpu.dot_dimension_numbers<[1], [0], [0], [1], [0, 0, 1, 1], [], []>} : vector<16x128xf32>, vector<128x128xf32>, vector<16x128xf32> -> vector<16x128xf32>
    %c0_3 = arith.constant 0 : index
    %c0_4 = arith.constant 0 : index
    %3 = vector.load %arg3[%c0_3, %c0_4] : memref<1x128xf32, #tpu.memory_space<vmem>>, vector<1x128xf32>
    %4 = vector.broadcast %3 : vector<1x128xf32> to vector<16x128xf32>
    %5 = arith.addf %2, %4 : vector<16x128xf32>
    %c0_5 = arith.constant 0 : index
    %c0_6 = arith.constant 0 : index
    %6 = vector.load %arg4[%c0_5, %c0_6] : memref<16x128xf32, #tpu.memory_space<vmem>>, vector<16x128xf32>
    tpu.vector_store %arg4[%c0_5, %c0_6], %5 {strides = array<i32>} : memref<16x128xf32, #tpu.memory_space<vmem>>, vector<16x128xf32>,
    return
  }
  func.func @transform_0(%arg0: i32) -> (i32, i32) {
    %c0_i32 = arith.constant 0 : i32
    %c0_i32_0 = arith.constant 0 : i32
    return %arg0, %c0_i32 : i32, i32
  }
  func.func @transform_1(%arg0: i32) -> (i32, i32) {
    %c0_i32 = arith.constant 0 : i32
    %c0_i32_0 = arith.constant 0 : i32
    %c0_i32_1 = arith.constant 0 : i32
    return %c0_i32, %c0_i32_0 : i32, i32
  }
  func.func @transform_2(%arg0: i32) -> (i32, i32) {
    %c0_i32 = arith.constant 0 : i32
    %c0_i32_0 = arith.constant 0 : i32
    %c0_i32_1 = arith.constant 0 : i32
    return %c0_i32, %c0_i32_0 : i32, i32
  }
  func.func @transform_3(%arg0: i32) -> (i32, i32) {
    %c0_i32 = arith.constant 0 : i32
    %c0_i32_0 = arith.constant 0 : i32
    return %arg0, %c0_i32 : i32, i32
  }
}

module attributes {stable_mosaic.version = 11 : i64} {
  func.func @_linear_kernel(%arg0: i32, %arg1: memref<16x128xf32, #tpu.memory_space<vmem>>, %arg2: memref<128x128xf32, #tpu.memory_space<vmem>>, %arg3: memref<1x128xf32, #tpu.memory_space<vmem>>, %arg4: memref<16x128xf32, #tpu.memory_space<vmem>>) attributes {dimension_semantics = [#tpu.dimension_semantics<parallel>], iteration_bounds = array<i64: 1>, scalar_prefetch = 0 : i64, scratch_operands = 0 : i64, tpu.core_type = #tpu.core_type<tc>, window_params = [{transform_indices = @transform_0, window_bounds = array<i64: 16, 128>}, {pipeline_mode = #tpu.pipeline_mode<synchronous>, transform_indices = @transform_1, window_bounds = array<i64: 128, 128>}, {pipeline_mode = #tpu.pipeline_mode<synchronous>, transform_indices = @transform_2, window_bounds = array<i64: 1, 128>}, {transform_indices = @transform_3, window_bounds = array<i64: 16, 128>}]} {
    %c0 = arith.constant 0 : index
    %c0_0 = arith.constant 0 : index
    %0 = vector.load %arg1[%c0, %c0_0] : memref<16x128xf32, #tpu.memory_space<vmem>>, vector<16x128xf32>
    %c0_1 = arith.constant 0 : index
    %c0_2 = arith.constant 0 : index
    %1 = vector.load %arg2[%c0_1, %c0_2] : memref<128x128xf32, #tpu.memory_space<vmem>>, vector<128x128xf32>
    %cst = arith.constant dense<0.000000e+00> : vector<16x128xf32>
    %2 = tpu.matmul %0, %1, %cst {dimension_numbers = #tpu.dot_dimension_numbers<[1], [0], [0], [1], [0, 0, 1, 1], [], []>} : vector<16x128xf32>, vector<128x128xf32>, vector<16x128xf32> -> vector<16x128xf32>
    %c0_3 = arith.constant 0 : index
    %c0_4 = arith.constant 0 : index
    %3 = vector.load %arg3[%c0_3, %c0_4] : memref<1x128xf32, #tpu.memory_space<vmem>>, vector<1x128xf32>
    %4 = vector.broadcast %3 : vector<1x128xf32> to vector<16x128xf32>
    %5 = arith.addf %2, %4 : vector<16x128xf32>
    %c0_5 = arith.constant 0 : index
    %c0_6 = arith.constant 0 : index
    %6 = vector.load %arg4[%c0_5, %c0_6] : memref<16x128xf32, #tpu.memory_space<vmem>>, vector<16x128xf32>
    tpu.vector_store %arg4[%c0_5, %c0_6], %5 {strides = array<i32>} : memref<16x128xf32, #tpu.memory_space<vmem>>, vector<16x128xf32>,
    return
  }
  func.func @transform_0(%arg0: i32) -> (i32, i32) {
    %c0_i32 = arith.constant 0 : i32
    %c0_i32_0 = arith.constant 0 : i32
    return %arg0, %c0_i32 : i32, i32
  }
  func.func @transform_1(%arg0: i32) -> (i32, i32) {
    %c0_i32 = arith.constant 0 : i32
    %c0_i32_0 = arith.constant 0 : i32
    %c0_i32_1 = arith.constant 0 : i32
    return %c0_i32, %c0_i32_0 : i32, i32
  }
  func.func @transform_2(%arg0: i32) -> (i32, i32) {
    %c0_i32 = arith.constant 0 : i32
    %c0_i32_0 = arith.constant 0 : i32
    %c0_i32_1 = arith.constant 0 : i32
    return %c0_i32, %c0_i32_0 : i32, i32
  }
  func.func @transform_3(%arg0: i32) -> (i32, i32) {
    %c0_i32 = arith.constant 0 : i32
    %c0_i32_0 = arith.constant 0 : i32
    return %arg0, %c0_i32 : i32, i32
  }
}

module attributes {stable_mosaic.version = 11 : i64} {
  func.func @_mha_kernel(%arg0: i32, %arg1: i32, %arg2: memref<1x8x32xf32, #tpu.memory_space<vmem>>, %arg3: memref<1x8x32xf32, #tpu.memory_space<vmem>>, %arg4: memref<1x8x32xf32, #tpu.memory_space<vmem>>, %arg5: memref<1x8x32xf32, #tpu.memory_space<vmem>>) attributes {dimension_semantics = [#tpu.dimension_semantics<parallel>, #tpu.dimension_semantics<parallel>], iteration_bounds = array<i64: 8, 1>, scalar_prefetch = 0 : i64, scratch_operands = 0 : i64, tpu.core_type = #tpu.core_type<tc>, window_params = [{transform_indices = @transform_0, window_bounds = array<i64: 1, 8, 32>}, {transform_indices = @transform_1, window_bounds = array<i64: 1, 8, 32>}, {transform_indices = @transform_2, window_bounds = array<i64: 1, 8, 32>}, {transform_indices = @transform_3, window_bounds = array<i64: 1, 8, 32>}]} {
    %c0 = arith.constant 0 : index
    %c0_0 = arith.constant 0 : index
    %c0_1 = arith.constant 0 : index
    %0 = vector.load %arg2[%c0, %c0_0, %c0_1] : memref<1x8x32xf32, #tpu.memory_space<vmem>>, vector<1x8x32xf32>
    %1 = vector.shape_cast %0 : vector<1x8x32xf32> to vector<8x32xf32>
    %c0_2 = arith.constant 0 : index
    %c0_3 = arith.constant 0 : index
    %c0_4 = arith.constant 0 : index
    %2 = vector.load %arg3[%c0_2, %c0_3, %c0_4] : memref<1x8x32xf32, #tpu.memory_space<vmem>>, vector<1x8x32xf32>
    %3 = vector.shape_cast %2 : vector<1x8x32xf32> to vector<8x32xf32>
    %c0_5 = arith.constant 0 : index
    %c0_6 = arith.constant 0 : index
    %c0_7 = arith.constant 0 : index
    %4 = vector.load %arg4[%c0_5, %c0_6, %c0_7] : memref<1x8x32xf32, #tpu.memory_space<vmem>>, vector<1x8x32xf32>
    %5 = vector.shape_cast %4 : vector<1x8x32xf32> to vector<8x32xf32>
    %cst = arith.constant dense<0.000000e+00> : vector<8x8xf32>
    %6 = tpu.matmul %1, %3, %cst {dimension_numbers = #tpu.dot_dimension_numbers<[1], [1], [0], [0], [0, 0, 1, 0], [], []>} : vector<8x32xf32>, vector<8x32xf32>, vector<8x8xf32> -> vector<8x8xf32>
    %cst_8 = arith.constant 0.176776692 : f32
    %7 = vector.broadcast %cst_8 : f32 to vector<8x8xf32>
    %8 = arith.mulf %6, %7 : vector<8x8xf32>
    %cst_9 = arith.constant dense<0xFF800000> : vector<8xf32>
    %9 = vector.multi_reduction <maximumf>, %8, %cst_9 [1] : vector<8x8xf32> to vector<8xf32>
    %10 = vector.shape_cast %9 : vector<8xf32> to vector<8x1xf32>
    %11 = vector.broadcast %10 : vector<8x1xf32> to vector<8x8xf32>
    %12 = arith.subf %8, %11 : vector<8x8xf32>
    %13 = math.exp %12 : vector<8x8xf32>
    %cst_10 = arith.constant dense<0.000000e+00> : vector<8xf32>
    %14 = vector.multi_reduction <add>, %13, %cst_10 [1] : vector<8x8xf32> to vector<8xf32>
    %15 = vector.shape_cast %14 : vector<8xf32> to vector<8x1xf32>
    %16 = vector.broadcast %15 : vector<8x1xf32> to vector<8x8xf32>
    %17 = arith.divf %13, %16 : vector<8x8xf32>
    %cst_11 = arith.constant dense<0.000000e+00> : vector<8x32xf32>
    %18 = tpu.matmul %17, %5, %cst_11 {dimension_numbers = #tpu.dot_dimension_numbers<[1], [0], [0], [1], [0, 0, 1, 1], [], []>} : vector<8x8xf32>, vector<8x32xf32>, vector<8x32xf32> -> vector<8x32xf32>
    %c0_12 = arith.constant 0 : index
    %c0_13 = arith.constant 0 : index
    %c0_14 = arith.constant 0 : index
    %19 = vector.load %arg5[%c0_12, %c0_13, %c0_14] : memref<1x8x32xf32, #tpu.memory_space<vmem>>, vector<1x8x32xf32>
    %20 = vector.shape_cast %19 : vector<1x8x32xf32> to vector<8x32xf32>
    %21 = vector.shape_cast %18 : vector<8x32xf32> to vector<1x8x32xf32>
    tpu.vector_store %arg5[%c0_12, %c0_13, %c0_14], %21 {strides = array<i32>} : memref<1x8x32xf32, #tpu.memory_space<vmem>>, vector<1x8x32xf32>,
    return
  }
  func.func @transform_0(%arg0: i32, %arg1: i32) -> (i32, i32, i32) {
    %c0_i32 = arith.constant 0 : i32
    %c0_i32_0 = arith.constant 0 : i32
    return %arg0, %arg1, %c0_i32 : i32, i32, i32
  }
  func.func @transform_1(%arg0: i32, %arg1: i32) -> (i32, i32, i32) {
    %c0_i32 = arith.constant 0 : i32
    %c0_i32_0 = arith.constant 0 : i32
    %c0_i32_1 = arith.constant 0 : i32
    return %arg0, %c0_i32, %c0_i32_0 : i32, i32, i32
  }
  func.func @transform_2(%arg0: i32, %arg1: i32) -> (i32, i32, i32) {
    %c0_i32 = arith.constant 0 : i32
    %c0_i32_0 = arith.constant 0 : i32
    %c0_i32_1 = arith.constant 0 : i32
    return %arg0, %c0_i32, %c0_i32_0 : i32, i32, i32
  }
  func.func @transform_3(%arg0: i32, %arg1: i32) -> (i32, i32, i32) {
    %c0_i32 = arith.constant 0 : i32
    %c0_i32_0 = arith.constant 0 : i32
    return %arg0, %arg1, %c0_i32 : i32, i32, i32
  }
}

module attributes {stable_mosaic.version = 11 : i64} {
  func.func @_linear_kernel(%arg0: i32, %arg1: memref<16x128xf32, #tpu.memory_space<vmem>>, %arg2: memref<128x128xf32, #tpu.memory_space<vmem>>, %arg3: memref<1x128xf32, #tpu.memory_space<vmem>>, %arg4: memref<16x128xf32, #tpu.memory_space<vmem>>) attributes {dimension_semantics = [#tpu.dimension_semantics<parallel>], iteration_bounds = array<i64: 1>, scalar_prefetch = 0 : i64, scratch_operands = 0 : i64, tpu.core_type = #tpu.core_type<tc>, window_params = [{transform_indices = @transform_0, window_bounds = array<i64: 16, 128>}, {pipeline_mode = #tpu.pipeline_mode<synchronous>, transform_indices = @transform_1, window_bounds = array<i64: 128, 128>}, {pipeline_mode = #tpu.pipeline_mode<synchronous>, transform_indices = @transform_2, window_bounds = array<i64: 1, 128>}, {transform_indices = @transform_3, window_bounds = array<i64: 16, 128>}]} {
    %c0 = arith.constant 0 : index
    %c0_0 = arith.constant 0 : index
    %0 = vector.load %arg1[%c0, %c0_0] : memref<16x128xf32, #tpu.memory_space<vmem>>, vector<16x128xf32>
    %c0_1 = arith.constant 0 : index
    %c0_2 = arith.constant 0 : index
    %1 = vector.load %arg2[%c0_1, %c0_2] : memref<128x128xf32, #tpu.memory_space<vmem>>, vector<128x128xf32>
    %cst = arith.constant dense<0.000000e+00> : vector<16x128xf32>
    %2 = tpu.matmul %0, %1, %cst {dimension_numbers = #tpu.dot_dimension_numbers<[1], [0], [0], [1], [0, 0, 1, 1], [], []>} : vector<16x128xf32>, vector<128x128xf32>, vector<16x128xf32> -> vector<16x128xf32>
    %c0_3 = arith.constant 0 : index
    %c0_4 = arith.constant 0 : index
    %3 = vector.load %arg3[%c0_3, %c0_4] : memref<1x128xf32, #tpu.memory_space<vmem>>, vector<1x128xf32>
    %4 = vector.broadcast %3 : vector<1x128xf32> to vector<16x128xf32>
    %5 = arith.addf %2, %4 : vector<16x128xf32>
    %c0_5 = arith.constant 0 : index
    %c0_6 = arith.constant 0 : index
    %6 = vector.load %arg4[%c0_5, %c0_6] : memref<16x128xf32, #tpu.memory_space<vmem>>, vector<16x128xf32>
    tpu.vector_store %arg4[%c0_5, %c0_6], %5 {strides = array<i32>} : memref<16x128xf32, #tpu.memory_space<vmem>>, vector<16x128xf32>,
    return
  }
  func.func @transform_0(%arg0: i32) -> (i32, i32) {
    %c0_i32 = arith.constant 0 : i32
    %c0_i32_0 = arith.constant 0 : i32
    return %arg0, %c0_i32 : i32, i32
  }
  func.func @transform_1(%arg0: i32) -> (i32, i32) {
    %c0_i32 = arith.constant 0 : i32
    %c0_i32_0 = arith.constant 0 : i32
    %c0_i32_1 = arith.constant 0 : i32
    return %c0_i32, %c0_i32_0 : i32, i32
  }
  func.func @transform_2(%arg0: i32) -> (i32, i32) {
    %c0_i32 = arith.constant 0 : i32
    %c0_i32_0 = arith.constant 0 : i32
    %c0_i32_1 = arith.constant 0 : i32
    return %c0_i32, %c0_i32_0 : i32, i32
  }
  func.func @transform_3(%arg0: i32) -> (i32, i32) {
    %c0_i32 = arith.constant 0 : i32
    %c0_i32_0 = arith.constant 0 : i32
    return %arg0, %c0_i32 : i32, i32
  }
}

</mosaic_0001>

<bundles_post_ra>
// kernel: multi_head_attention.5
= control target key start
LH: loop header
LB: loop body
LE: loop exit
PB: predicated region body
PF: predicated region fallthrough
CT: control target
= control target key end

     0   :  { %8 = vsyncpa [#allocation3], 0  ;;  %s250_s0 = inlined_call_operand.hbm [shape: f32[16,128], index: 0, kind: input, shape index: {}]   ;;  %s251_s1 = inlined_call_operand.hbm [shape: f32[128,128], index: 1, kind: input, shape index: {}]   ;;  %s252_s2 = inlined_call_operand.hbm [shape: f32[1,128], index: 2, kind: input, shape index: {}]   ;;  %s253_s3 = inlined_call_operand.vmem [shape: f32[16,128], index: 3, kind: output, shape index: {}]  }
   0x1   :  { %9 = vsyncpa [#allocation5], 0  ;;  %s27_s14 = sshll.u32 %s251_s1, 4  ;;  %s210_s15 = smov [#allocation4]   ;;  %s28_s14 = int_to_ptr.hbm [resolvable:$true] %s27_s14 }
   0x2   :  { %s29_s16 = sshll.u32 %s210_s15, 4  ;;  %s14_s19 = sshll.u32 %s250_s0, 4  ;;  %s30_s16 = int_to_ptr.vmem [resolvable:$true] %s29_s16  ;;  %s15_s19 = int_to_ptr.hbm [resolvable:$true] %s14_s19 }
   0x3   :  { %s211_s20 = smov 128   ;;  %s212_s21 = smov 8  }
   0x4   :  { %35 = dma.hbm_to_vmem [thread:$0]  %s28_s14, 2048, %s30_s16, [#allocation5], %s211_s20, %s211_s20, %s212_s21  }
   0x5   :  { %s213_s22 = smov [#allocation2]   ;;  %s41_s26 = sshll.u32 %s252_s2, 4  ;;  %s42_s26 = int_to_ptr.hbm [resolvable:$true] %s41_s26 }
   0x6   :  { %s16_s23 = sshll.u32 %s213_s22, 4  ;;  %s214_s1 = smov [#allocation6]   ;;  %s17_s23 = int_to_ptr.vmem [resolvable:$true] %s16_s23 }
   0x7   :  { %22 = dma.hbm_to_vmem [thread:$0]  %s15_s19, 256, %s17_s23, [#allocation3], %s211_s20, %s211_s20, %s212_s21  }
   0x8   :  { %s43_s27 = sshll.u32 %s214_s1, 4  ;;  %s44_s27 = int_to_ptr.vmem [resolvable:$true] %s43_s27 }
   0x9   :  { %46 = dma.hbm_to_vmem [thread:$0]  %s42_s26, 16, %s44_s27, [#allocation5]  }
   0xa   :  { %206 = dma.done.wait [#allocation3], 256  }
   0xb   :  { %207 = vsyncadd [#allocation3], 4294967040 }
   0xc   :  { %208 = dma.done.wait [#allocation5], 2064  }
   0xd   :  { %209 = vsyncadd [#allocation5], 4294965232  ;;  %v76_v0 = vld [vmem:[#allocation4 + $0x78] sm:$0xff]  ;;  %v75_v1 = vld [vmem:[#allocation4 + $0x70] sm:$0xff] }
   0xe   :  { %81 = vmatpush.msra.mxu0 %v76_v0  ;;  %112 = vmatpush.msra.mxu1 %v76_v0  ;;  %v74_v2 = vld [vmem:[#allocation4 + $0x68] sm:$0xff]  ;;  %v73_v3 = vld [vmem:[#allocation4 + $0x60] sm:$0xff]  ;;  %v72_v4 = vld [vmem:[#allocation4 + $0x58] sm:$0xff] }
   0xf   :  { %v71_v5 = vld [vmem:[#allocation4 + $0x50] sm:$0xff]  ;;  %v70_v6 = vld [vmem:[#allocation4 + $0x48] sm:$0xff]  ;;  %v69_v7 = vld [vmem:[#allocation4 + $0x40] sm:$0xff] }
  0x10   :  { %82 = vmatpush.msra.mxu0 %v75_v1  ;;  %113 = vmatpush.msra.mxu1 %v75_v1  ;;  %v68_v8 = vld [vmem:[#allocation4 + $0x38] sm:$0xff]  ;;  %v67_v9 = vld [vmem:[#allocation4 + $0x30] sm:$0xff]  ;;  %v66_v10 = vld [vmem:[#allocation4 + $0x28] sm:$0xff] }
  0x11   :  { %v65_v11 = vld [vmem:[#allocation4 + $0x20] sm:$0xff]  ;;  %v64_v12 = vld [vmem:[#allocation4 + $0x18] sm:$0xff]  ;;  %v63_v13 = vld [vmem:[#allocation4 + $0x10] sm:$0xff] }
  0x12   :  { %83 = vmatpush.msra.mxu0 %v74_v2  ;;  %114 = vmatpush.msra.mxu1 %v74_v2  ;;  %v62_v14 = vld [vmem:[#allocation4 + $0x8] sm:$0xff]  ;;  %v61_v15 = vld [vmem:[#allocation4] sm:$0xff]  ;;  %v59_v16 = vld [vmem:[#allocation2] sm:$0xff] }
  0x13   :  { %v60_v17 = vld [vmem:[#allocation2 + $0x8] sm:$0xff]  ;;  %v133_v18 = vld [vmem:[#allocation6] ss:$0 sm:$0xff] }
  0x14   :  { %84 = vmatpush.msra.mxu0 %v73_v3  ;;  %115 = vmatpush.msra.mxu1 %v73_v3 }
  0x16   :  { %85 = vmatpush.msra.mxu0 %v72_v4  ;;  %116 = vmatpush.msra.mxu1 %v72_v4 }
  0x18   :  { %86 = vmatpush.msra.mxu0 %v71_v5  ;;  %117 = vmatpush.msra.mxu1 %v71_v5 }
  0x1a   :  { %87 = vmatpush.msra.mxu0 %v70_v6  ;;  %118 = vmatpush.msra.mxu1 %v70_v6 }
  0x1c   :  { %88 = vmatpush.msra.mxu0 %v69_v7  ;;  %119 = vmatpush.msra.mxu1 %v69_v7 }
  0x1e   :  { %89 = vmatpush.msra.mxu0 %v68_v8  ;;  %120 = vmatpush.msra.mxu1 %v68_v8 }
  0x20   :  { %90 = vmatpush.msra.mxu0 %v67_v9  ;;  %121 = vmatpush.msra.mxu1 %v67_v9 }
  0x22   :  { %91 = vmatpush.msra.mxu0 %v66_v10  ;;  %122 = vmatpush.msra.mxu1 %v66_v10 }
  0x24   :  { %92 = vmatpush.msra.mxu0 %v65_v11  ;;  %123 = vmatpush.msra.mxu1 %v65_v11 }
  0x26   :  { %93 = vmatpush.msra.mxu0 %v64_v12  ;;  %124 = vmatpush.msra.mxu1 %v64_v12 }
  0x28   :  { %94 = vmatpush.msra.mxu0 %v63_v13  ;;  %125 = vmatpush.msra.mxu1 %v63_v13 }
  0x2a   :  { %95 = vmatpush.msra.mxu0 %v62_v14  ;;  %126 = vmatpush.msra.mxu1 %v62_v14 }
  0x2c   :  { %96 = vmatpush.msra.mxu0 %v61_v15  ;;  %127 = vmatpush.msra.mxu1 %v61_v15 }
  0x2d   :  { %97 = vmatmul.f32.vlgmr.msra.gmra.mxu0 %v59_v16  ;;  %100 = vmatmul.f32.vlgmr.msra.gmra.mxu1 %v60_v17 }
  0xaa   :  { %v98_v19 = vpop.f32.mrf.mxu0  ;;  %v101_v20 = vpop.f32.mrf.mxu1 }
  0xab   :  { %v99_v21 = vadd.f32 %v133_v18, %v98_v19  ;;  %v102_v22 = vadd.f32 %v133_v18, %v101_v20 }
  0xad   :  { %104 = vst [vmem:[%s253_s3] sm:$0xff] %v99_v21 }
  0xae   :  { %105 = vst [vmem:[%s253_s3 + $0x8] sm:$0xff] %v102_v22 }
  0xaf   :  { %110 = vsyncpa [#allocation3], 1 }
  0xb0   :  { %111 = vsyncpa [#allocation5], 1 }

// kernel: multi_head_attention.6
= control target key start
LH: loop header
LB: loop body
LE: loop exit
PB: predicated region body
PF: predicated region fallthrough
CT: control target
= control target key end

     0   :  { %s165_s1 = inlined_call_operand.vmem [shape: f32[128,128], index: 1, kind: input, shape index: {}]   ;;  %s166_s2 = inlined_call_operand.vmem [shape: f32[1,128], index: 2, kind: input, shape index: {}]   ;;  %s167_s0 = inlined_call_operand.vmem [shape: f32[16,128], index: 0, kind: input, shape index: {}]   ;;  %s168_s3 = inlined_call_operand.vmem [shape: f32[16,128], index: 3, kind: output, shape index: {}]  }
   0x1   :  { %v31_v0 = vld [vmem:[%s165_s1 + $0x78] sm:$0xff]  ;;  %v30_v1 = vld [vmem:[%s165_s1 + $0x70] sm:$0xff]  ;;  %v29_v2 = vld [vmem:[%s165_s1 + $0x68] sm:$0xff] }
   0x2   :  { %36 = vmatpush.msra.mxu0 %v31_v0  ;;  %65 = vmatpush.msra.mxu1 %v31_v0  ;;  %v28_v3 = vld [vmem:[%s165_s1 + $0x60] sm:$0xff]  ;;  %v27_v4 = vld [vmem:[%s165_s1 + $0x58] sm:$0xff]  ;;  %v26_v5 = vld [vmem:[%s165_s1 + $0x50] sm:$0xff] }
   0x3   :  { %v25_v6 = vld [vmem:[%s165_s1 + $0x48] sm:$0xff]  ;;  %v24_v7 = vld [vmem:[%s165_s1 + $0x40] sm:$0xff]  ;;  %v23_v8 = vld [vmem:[%s165_s1 + $0x38] sm:$0xff] }
   0x4   :  { %37 = vmatpush.msra.mxu0 %v30_v1  ;;  %66 = vmatpush.msra.mxu1 %v30_v1  ;;  %v22_v9 = vld [vmem:[%s165_s1 + $0x30] sm:$0xff]  ;;  %v21_v10 = vld [vmem:[%s165_s1 + $0x28] sm:$0xff]  ;;  %v20_v11 = vld [vmem:[%s165_s1 + $0x20] sm:$0xff] }
   0x5   :  { %v19_v12 = vld [vmem:[%s165_s1 + $0x18] sm:$0xff]  ;;  %v18_v13 = vld [vmem:[%s165_s1 + $0x10] sm:$0xff]  ;;  %v17_v14 = vld [vmem:[%s165_s1 + $0x8] sm:$0xff] }
   0x6   :  { %38 = vmatpush.msra.mxu0 %v29_v2  ;;  %67 = vmatpush.msra.mxu1 %v29_v2  ;;  %v16_v15 = vld [vmem:[%s165_s1] sm:$0xff]  ;;  %v15_v17 = vld [vmem:[%s167_s0 + $0x8] sm:$0xff] }
   0x7   :  { %v14_v16 = vld [vmem:[%s167_s0] sm:$0xff] }
   0x8   :  { %39 = vmatpush.msra.mxu0 %v28_v3  ;;  %68 = vmatpush.msra.mxu1 %v28_v3  ;;  %v81_v18 = vld [vmem:[%s166_s2] ss:$0 sm:$0xff] }
   0xa   :  { %40 = vmatpush.msra.mxu0 %v27_v4  ;;  %69 = vmatpush.msra.mxu1 %v27_v4 }
   0xc   :  { %41 = vmatpush.msra.mxu0 %v26_v5  ;;  %70 = vmatpush.msra.mxu1 %v26_v5 }
   0xe   :  { %42 = vmatpush.msra.mxu0 %v25_v6  ;;  %71 = vmatpush.msra.mxu1 %v25_v6 }
  0x10   :  { %43 = vmatpush.msra.mxu0 %v24_v7  ;;  %72 = vmatpush.msra.mxu1 %v24_v7 }
  0x12   :  { %44 = vmatpush.msra.mxu0 %v23_v8  ;;  %73 = vmatpush.msra.mxu1 %v23_v8 }
  0x14   :  { %45 = vmatpush.msra.mxu0 %v22_v9  ;;  %74 = vmatpush.msra.mxu1 %v22_v9 }
  0x16   :  { %46 = vmatpush.msra.mxu0 %v21_v10  ;;  %75 = vmatpush.msra.mxu1 %v21_v10 }
  0x18   :  { %47 = vmatpush.msra.mxu0 %v20_v11  ;;  %76 = vmatpush.msra.mxu1 %v20_v11 }
  0x1a   :  { %48 = vmatpush.msra.mxu0 %v19_v12  ;;  %77 = vmatpush.msra.mxu1 %v19_v12 }
  0x1c   :  { %49 = vmatpush.msra.mxu0 %v18_v13  ;;  %78 = vmatpush.msra.mxu1 %v18_v13 }
  0x1e   :  { %50 = vmatpush.msra.mxu0 %v17_v14  ;;  %79 = vmatpush.msra.mxu1 %v17_v14 }
  0x20   :  { %51 = vmatpush.msra.mxu0 %v16_v15  ;;  %80 = vmatpush.msra.mxu1 %v16_v15 }
  0x21   :  { %52 = vmatmul.f32.vlgmr.msra.gmra.mxu0 %v14_v16  ;;  %55 = vmatmul.f32.vlgmr.msra.gmra.mxu1 %v15_v17 }
  0x9e   :  { %v53_v19 = vpop.f32.mrf.mxu0  ;;  %v56_v20 = vpop.f32.mrf.mxu1 }
  0x9f   :  { %v54_v21 = vadd.f32 %v81_v18, %v53_v19  ;;  %v57_v22 = vadd.f32 %v81_v18, %v56_v20 }
  0xa1   :  { %59 = vst [vmem:[%s168_s3] sm:$0xff] %v54_v21 }
  0xa2   :  { %60 = vst [vmem:[%s168_s3 + $0x8] sm:$0xff] %v57_v22 }

// kernel: multi_head_attention.8
= control target key start
LH: loop header
LB: loop body
LE: loop exit
PB: predicated region body
PF: predicated region fallthrough
CT: control target
= control target key end

     0   :  { %s495_s12 = smov 0   ;;  %s497_s13 = smov 0   ;;  %s546_s0 = inlined_call_operand.vmem [shape: f32[8,8,32], index: 0, kind: input, shape index: {}]   ;;  %s547_s1 = inlined_call_operand.vmem [shape: f32[8,8,32], index: 1, kind: input, shape index: {}]   ;;  %s548_s2 = inlined_call_operand.vmem [shape: f32[8,8,32], index: 2, kind: input, shape index: {}]   ;;  %s549_s3 = inlined_call_operand.vmem [shape: f32[8,8,32], index: 3, kind: output, shape index: {}]  }
   0x1   :  { %s499_s14 = smov 0  }
   0x2 LB: > { %s25_s15 = sadd.s32 1, %s469_s13  ;;  %p413_p0 = scmp.ge.s32.totalorder %s473_s14, 1  ;;  %s473_s14 = sphi %s499_s14, %s13_s14   ;;  %s469_s13 = sphi %s497_s13, %s551_s13   ;;  %s465_s12 = sphi %s495_s12, %s550_s12  }
   0x3   : > { %p27_p1 = scmp.ge.s32.totalorder %s25_s15, 8  ;;  %p173_p2 = scmp.lt.s32.totalorder %s473_s14, 9 }
   0x5   : > { %s553_s15 = smov (%p27_p1, %s25_s15), 0  ;;  %p174_p3 = pnand %p413_p0, %p173_p2 }
   0x6   : > { %p209_p4 = scmp.lt.s32.totalorder (!%p174_p3), %s465_s12, 7 }
   0x7   : > { %177 = sbr.rel (%p174_p3) target bundleno = 538 (0x21a), region = 32 }
   0xc   : > { %s555_s12 = smov (!%p209_p4, %s465_s12), 7  ;;  %vm234_vm0 = vcmask 261120   ;;  %vm262_vm1 = vcmask 64512  }
   0xd   : > { %s513_s16 = sshll.u32 %s555_s12, 3 }
   0xe   : > { %s219_s19 = scalar_lea.vmem %s547_s1, %s513_s16  ;;  %s215_s22 = scalar_lea.vmem %s546_s0, %s513_s16 }
   0xf   : > { %v232_v0 = vld [vmem:[%s219_s19] sm:$0xff]  ;;  %s223_s25 = scalar_lea.vmem %s548_s2, %s513_s16  ;;  %s230_s28 = scalar_lea.vmem %s549_s3, %s513_s16 }
  0x10   : > { %418 = vmatpush.xpose.msk.msra.mxu0 %vm234_vm0, %v232_v0  ;;  %v231_v1 = vld [vmem:[%s215_s22] sm:$0xff] }
  0x11   : > { %v233_v10 = vld [vmem:[%s223_s25] sm:$0xff] }
  0x12   : > { %305 = vmatpush.msra.mxu1 %v233_v10 }
  0x13   : > { %419 = vmatmul.msk.f32.vlgmr.msra.gmra.mxu0 %vm234_vm0, %v231_v1 }
  0x90   : > { %v258_v2 = vpop.f32.mrf.mxu0 }
  0x91   : > { %v261_v3 = vmul.f32 0.17677669, %v258_v2 }
  0x93   : > { %v263_v4 = vsel %vm262_vm1, %v261_v3, -inf }
  0x94   : > { %264 = vmax.xlane.f32.xlu0 %v263_v4 }
 0x107   : > { %v265_v5 = vpop.xlane.xlu0 %264 }
 0x108   : > { %v266_v6 = vsub.f32 %v261_v3, %v265_v5 }
 0x10a   : > { %v267_v7 = vmul.f32 1.442695, %v266_v6 }
 0x10c   : > { %447 = vpow2.f32 %v267_v7 }
 0x112   : > { %v448_v8 = vpop.eup %447 }
 0x113   : > { %v269_v9 = vsel %vm262_vm1, %v448_v8, 0.0 }
 0x114   : > { %270 = vadd.xlane.f32.xlu0 %v269_v9 }
 0x187   : > { %v271_v11 = vpop.xlane.xlu0 %270 }
 0x188   : > { %449 = vrcp.f32 %v271_v11  ;;  %v283_v15 = vand.u32 2147483648, %v271_v11  ;;  %v281_v17 = vand.u32 2147483647, %v271_v11  ;;  %vm277_vm3 = vweird.f32 %v271_v11 }
 0x18a   : > { %v284_v19 = vor.u32 1.1754944e-38, %v283_v15  ;;  %vm282_vm5 = vcmp.eq.f32.partialorder %v281_v17, 8.507059e+37 }
 0x18e   : > { %v450_v12 = vpop.eup %449 }
 0x18f   : > { %v273_v13 = vmul.f32 %v450_v12, %v271_v11  ;;  %vm278_vm2 = vweird.f32 %v450_v12 }
 0x190   : > { %vm279_vm4 = vmor %vm277_vm3, %vm278_vm2 }
 0x191   : > { %v274_v14 = vsub.f32 1.0, %v273_v13 }
 0x193   : > { %v275_v16 = vmul.f32 %v450_v12, %v274_v14 }
 0x195   : > { %v276_v18 = vadd.f32 %v450_v12, %v275_v16 }
 0x197   : > { %v280_v20 = vsel %vm279_vm4, %v450_v12, %v276_v18 }
 0x198   : > { %v285_v21 = vsel %vm282_vm5, %v284_v19, %v280_v20 }
 0x199   : > { %v286_v22 = vmul.f32 %v448_v8, %v285_v21 }
 0x19b   : > { %420 = vmatmul.msk.f32.vlgmr.msra.gmra.mxu1 %vm262_vm1, %v286_v22 }
 0x218   : > { %v307_v23 = vpop.f32.mrf.mxu1 }
 0x219   : > { %310 = vst.msk [vmem:[%s230_s28] sm:$0xff] %vm234_vm0, %v307_v23 }
 0x21a PF: > { %s13_s14 = sadd.s32 1, %s473_s14   ;;  %s550_s12 = smov %s469_s13 }
 0x21b   : > { %p10_p5 = scmp.ge.s32.totalorder %s13_s14, 10   ;;  %s551_s13 = smov %s553_s15 }
 0x21d   :  { %12 = sbr.rel (!%p10_p5) target bundleno = 2 (0x2), region = 68 }

// kernel: multi_head_attention.9
= control target key start
LH: loop header
LB: loop body
LE: loop exit
PB: predicated region body
PF: predicated region fallthrough
CT: control target
= control target key end

     0   :  { %s209_s0 = inlined_call_operand.vmem [shape: f32[16,128], index: 0, kind: input, shape index: {}]   ;;  %s210_s1 = inlined_call_operand.vmem [shape: f32[128,128], index: 1, kind: input, shape index: {}]   ;;  %s211_s2 = inlined_call_operand.vmem [shape: f32[1,128], index: 2, kind: input, shape index: {}]   ;;  %s212_s3 = inlined_call_operand.hbm [shape: f32[16,128], index: 3, kind: output, shape index: {}]  }
   0x1   :  { %v32_v0 = vld [vmem:[%s210_s1 + $0x78] sm:$0xff]  ;;  %v31_v1 = vld [vmem:[%s210_s1 + $0x70] sm:$0xff]  ;;  %v30_v2 = vld [vmem:[%s210_s1 + $0x68] sm:$0xff] }
   0x2   :  { %37 = vmatpush.msra.mxu0 %v32_v0  ;;  %80 = vmatpush.msra.mxu1 %v32_v0  ;;  %v29_v3 = vld [vmem:[%s210_s1 + $0x60] sm:$0xff]  ;;  %v28_v4 = vld [vmem:[%s210_s1 + $0x58] sm:$0xff] }
   0x4   :  { %38 = vmatpush.msra.mxu0 %v31_v1  ;;  %81 = vmatpush.msra.mxu1 %v31_v1 }
   0x6   :  { %39 = vmatpush.msra.mxu0 %v30_v2  ;;  %82 = vmatpush.msra.mxu1 %v30_v2 }
   0x7   :  { %8 = vsyncpa [#allocation3], 0  ;;  %v27_v5 = vld [vmem:[%s210_s1 + $0x50] sm:$0xff]  ;;  %v26_v6 = vld [vmem:[%s210_s1 + $0x48] sm:$0xff]  ;;  %s126_s23 = smov [#allocation2]   ;;  %s68_s26 = sshll.u32 %s212_s3, 4  ;;  %s69_s26 = int_to_ptr.hbm [resolvable:$true] %s68_s26 }
   0x8   :  { %40 = vmatpush.msra.mxu0 %v29_v3  ;;  %83 = vmatpush.msra.mxu1 %v29_v3  ;;  %v25_v7 = vld [vmem:[%s210_s1 + $0x40] sm:$0xff]  ;;  %v24_v8 = vld [vmem:[%s210_s1 + $0x38] sm:$0xff]  ;;  %v23_v9 = vld [vmem:[%s210_s1 + $0x30] sm:$0xff]  ;;  %s128_s27 = smov 8  }
   0x9   :  { %v22_v10 = vld [vmem:[%s210_s1 + $0x28] sm:$0xff]  ;;  %v21_v11 = vld [vmem:[%s210_s1 + $0x20] sm:$0xff]  ;;  %v20_v12 = vld [vmem:[%s210_s1 + $0x18] sm:$0xff] }
   0xa   :  { %41 = vmatpush.msra.mxu0 %v28_v4  ;;  %84 = vmatpush.msra.mxu1 %v28_v4  ;;  %v19_v13 = vld [vmem:[%s210_s1 + $0x10] sm:$0xff]  ;;  %v18_v14 = vld [vmem:[%s210_s1 + $0x8] sm:$0xff]  ;;  %v17_v15 = vld [vmem:[%s210_s1] sm:$0xff]  ;;  %s66_s1 = sshll.u32 %s126_s23, 4  ;;  %s67_s1 = int_to_ptr.vmem [resolvable:$true] %s66_s1 }
   0xb   :  { %v15_v16 = vld [vmem:[%s209_s0] sm:$0xff]  ;;  %v16_v17 = vld [vmem:[%s209_s0 + $0x8] sm:$0xff]  ;;  %s127_s0 = smov 128  }
   0xc   :  { %42 = vmatpush.msra.mxu0 %v27_v5  ;;  %85 = vmatpush.msra.mxu1 %v27_v5  ;;  %v99_v18 = vld [vmem:[%s211_s2] ss:$0 sm:$0xff] }
   0xe   :  { %43 = vmatpush.msra.mxu0 %v26_v6  ;;  %86 = vmatpush.msra.mxu1 %v26_v6 }
  0x10   :  { %44 = vmatpush.msra.mxu0 %v25_v7  ;;  %87 = vmatpush.msra.mxu1 %v25_v7 }
  0x12   :  { %45 = vmatpush.msra.mxu0 %v24_v8  ;;  %88 = vmatpush.msra.mxu1 %v24_v8 }
  0x14   :  { %46 = vmatpush.msra.mxu0 %v23_v9  ;;  %89 = vmatpush.msra.mxu1 %v23_v9 }
  0x16   :  { %47 = vmatpush.msra.mxu0 %v22_v10  ;;  %90 = vmatpush.msra.mxu1 %v22_v10 }
  0x18   :  { %48 = vmatpush.msra.mxu0 %v21_v11  ;;  %91 = vmatpush.msra.mxu1 %v21_v11 }
  0x1a   :  { %49 = vmatpush.msra.mxu0 %v20_v12  ;;  %92 = vmatpush.msra.mxu1 %v20_v12 }
  0x1c   :  { %50 = vmatpush.msra.mxu0 %v19_v13  ;;  %93 = vmatpush.msra.mxu1 %v19_v13 }
  0x1e   :  { %51 = vmatpush.msra.mxu0 %v18_v14  ;;  %94 = vmatpush.msra.mxu1 %v18_v14 }
  0x20   :  { %52 = vmatpush.msra.mxu0 %v17_v15  ;;  %95 = vmatpush.msra.mxu1 %v17_v15 }
  0x21   :  { %53 = vmatmul.f32.vlgmr.msra.gmra.mxu0 %v15_v16  ;;  %56 = vmatmul.f32.vlgmr.msra.gmra.mxu1 %v16_v17 }
  0x9e   :  { %v54_v19 = vpop.f32.mrf.mxu0  ;;  %v57_v20 = vpop.f32.mrf.mxu1 }
  0x9f   :  { %v55_v21 = vadd.f32 %v99_v18, %v54_v19  ;;  %v58_v22 = vadd.f32 %v99_v18, %v57_v20 }
  0xa1   :  { %60 = vst [vmem:[#allocation2] sm:$0xff] %v55_v21 }
  0xa2   :  { %61 = vst [vmem:[#allocation2 + $0x8] sm:$0xff] %v58_v22 }
  0xa3   :  { %74 = dma.vmem_to_hbm [thread:$0]  %s67_s1, 256, %s69_s26, [#allocation3], %s127_s0, %s127_s0, %s128_s27  }
  0xa4   :  { %124 = dma.done.wait [#allocation3], 256  }
  0xa5   :  { %125 = vsyncadd [#allocation3], 4294967040 }
  0xa6   :  { %79 = vsyncpa [#allocation3], 1 }

</bundles_post_ra>
